<compile_context>
chip_gen: v6e
topology: v6e:2x2x1
jax: 0.10.0
libtpu: 0.0.40
codegen_flags: <defaults>
</compile_context>

<pallas_src>
import functools

import numpy as np
import jax
import jax.numpy as jnp
from jax.experimental import pallas as pl
from jax.experimental.pallas import tpu as pltpu

LANES = 128
_CORE_SPLIT = 2            # leading "parallel" grid axis: v7x megacore split, serial elsewhere
_TARGET_STEPS = 16         # aim for >= 8 reduction steps per core (pipeline depth)
_SMALL_INPUT_ELEMS = 1 << 18   # below this, XLA's fused elementwise+reduce wins

_ALLOWED_STREAM_DTYPES = (
    np.dtype(jnp.float32), np.dtype(jnp.bfloat16), np.dtype(jnp.float16))


def _round_up(x: int, m: int) -> int:
    return ((x + m - 1) // m) * m


def _partial_sqdiff_kernel(pred_ref, targ_ref, out_ref):
    """Accumulates per-lane sum((pred - targ)^2) into the resident output block.

    pred_ref / targ_ref : (tile_rows, 128) blocks (native dtype, upcast in-kernel).
    out_ref             : (1, 1, 128) f32 block; its index is constant along the
                          reduction axis, so it stays resident and acts as the
                          accumulator (no scratch needed).
    """
    step = pl.program_id(1)

    @pl.when(step == 0)
    def _init():
        out_ref[...] = jnp.zeros_like(out_ref)

    d = pred_ref[...].astype(jnp.float32) - targ_ref[...].astype(jnp.float32)
    out_ref[...] += jnp.sum(d * d, axis=0, keepdims=True).reshape(1, 1, LANES)


def loss_ref(pred1, p1, pred2, p2):
    """Pure-JAX reference mirroring torch.nn.MSELoss (mean reduction), summed."""
    f32 = jnp.float32
    mse1 = jnp.mean((pred1.astype(f32) - p1.astype(f32)) ** 2)
    mse2 = jnp.mean((pred2.astype(f32) - p2.astype(f32)) ** 2)
    return (mse1 + mse2).astype(f32)


@functools.partial(jax.jit, static_argnames=("max_tile_rows", "force_pallas"))
def loss_pallas(pred1, p1, pred2, p2, *, max_tile_rows: int = 4096,
                force_pallas: bool = False):
    """Scalar float32 loss = MSE(pred1, p1) + MSE(pred2, p2) (mean reduction)."""
    n_per = pred1.size                          # N * 3 (static)
    assert p1.size == n_per and pred2.size == n_per and p2.size == n_per
    total = 2 * n_per                           # stacked element count

    # Tiny problems: pallas_call dispatch overhead dwarfs the work.
    if not force_pallas and total < _SMALL_INPUT_ELEMS:
        return loss_ref(pred1, p1, pred2, p2)

    # Streaming dtype: keep 16-bit inputs 16-bit on the wire; upcast inside the kernel.
    common = jnp.promote_types(jnp.promote_types(pred1.dtype, p1.dtype),
                               jnp.promote_types(pred2.dtype, p2.dtype))
    stream_dtype = common if common in _ALLOWED_STREAM_DTYPES else np.dtype(jnp.float32)

    # ---- adaptive tiling: >= _TARGET_STEPS total grid steps, bounded padding waste ----
    rows = -(-total // LANES)                                   # cdiv
    tile_rows = _round_up(max(8, -(-rows // _TARGET_STEPS)), 8)
    tile_rows = min(tile_rows, _round_up(max(8, max_tile_rows), 8))
    blocks = _round_up(-(-rows // tile_rows), _CORE_SPLIT)      # even -> 2-way core split
    steps_per_core = blocks // _CORE_SPLIT
    padded_rows = blocks * tile_rows
    pad = padded_rows * LANES - total

    # ---- single fused copy per operand side (concat + zero-pad in one pass) ----
    zpad = jnp.zeros((pad,), dtype=stream_dtype)
    pred = jnp.concatenate(
        [pred1.reshape(-1).astype(stream_dtype),
         pred2.reshape(-1).astype(stream_dtype), zpad]).reshape(padded_rows, LANES)
    targ = jnp.concatenate(
        [p1.reshape(-1).astype(stream_dtype),
         p2.reshape(-1).astype(stream_dtype), zpad]).reshape(padded_rows, LANES)

    partials = pl.pallas_call(
        _partial_sqdiff_kernel,
        out_shape=jax.ShapeDtypeStruct((_CORE_SPLIT, 1, LANES), jnp.float32),
        grid=(_CORE_SPLIT, steps_per_core),
        in_specs=[
            pl.BlockSpec((tile_rows, LANES),
                         lambda c, s: (c * steps_per_core + s, 0)),
            pl.BlockSpec((tile_rows, LANES),
                         lambda c, s: (c * steps_per_core + s, 0)),
        ],
        out_specs=pl.BlockSpec((1, 1, LANES), lambda c, s: (c, 0, 0)),
        compiler_params=pltpu.CompilerParams(
            dimension_semantics=("parallel", "arbitrary"),
            # <= 8 MiB of double-buffered input tiles at the default tile size;
            # 32 MiB cap is safe on v5e/v6e (128 MiB phys) and v7x (64 MiB phys).
            vmem_limit_bytes=32 * 1024 * 1024,
        ),
    )(pred, targ)

    # Zero padding contributes 0; both MSEs share the true denominator N*3.
    return jnp.sum(partials) * (1.0 / n_per)


if __name__ == "__main__":
    key = jax.random.PRNGKey(0)
    k1, k2, k3, k4 = jax.random.split(key, 4)

    # Spec-sized inputs: pred/p tensors of shape (N, 3).
    N = 8
    p1 = jax.random.normal(k1, (N, 3), dtype=jnp.float32)
    p2 = jax.random.normal(k2, (N, 3), dtype=jnp.float32)
    pred1 = jax.random.normal(k3, (N, 3), dtype=jnp.float32)
    pred2 = jax.random.normal(k4, (N, 3), dtype=jnp.float32)

    ref = loss_ref(pred1, p1, pred2, p2)

    # 1) Force the Pallas kernel on the small spec-sized input (grid (2, 1) path).
    out = loss_pallas(pred1, p1, pred2, p2, force_pallas=True)
    jax.block_until_ready(out)
    assert jnp.allclose(out, ref, rtol=1e-5, atol=1e-5), (out, ref)

    # 2) Auto-dispatch: tiny input takes the fused pure-JAX fast path.
    auto = loss_pallas(pred1, p1, pred2, p2)
    assert jnp.allclose(auto, ref, rtol=1e-5, atol=1e-5), (auto, ref)

    # 3) Multi-step grid path (adaptive tile, zero-padded tail, both grid "cores").
    N2 = 3000
    k5, k6, k7, k8 = jax.random.split(jax.random.PRNGKey(1), 4)
    q1 = jax.random.normal(k5, (N2, 3), dtype=jnp.float32)
    q2 = jax.random.normal(k6, (N2, 3), dtype=jnp.float32)
    r1 = jax.random.normal(k7, (N2, 3), dtype=jnp.float32)
    r2 = jax.random.normal(k8, (N2, 3), dtype=jnp.float32)
    out2 = loss_pallas(r1, q1, r2, q2, force_pallas=True)
    jax.block_until_ready(out2)
    ref2 = loss_ref(r1, q1, r2, q2)
    assert jnp.allclose(out2, ref2, rtol=1e-5, atol=1e-5), (out2, ref2)

    # 4) bf16 streaming path (half the HBM bytes; f32 upcast + accumulation in-kernel).
    qb1, qb2, rb1, rb2 = (x.astype(jnp.bfloat16) for x in (q1, q2, r1, r2))
    out3 = loss_pallas(rb1, qb1, rb2, qb2, force_pallas=True)
    jax.block_until_ready(out3)
    ref3 = loss_ref(rb1, qb1, rb2, qb2)
    assert jnp.allclose(out3, ref3, rtol=1e-4, atol=1e-4), (out3, ref3)

    print("KERNEL_OK")
</pallas_src>

<mosaic_0001>
module attributes {stable_mosaic.version = 11 : i64} {
  func.func @_partial_sqdiff_kernel(%arg0: i32, %arg1: i32, %arg2: memref<8x128xf32, #tpu.memory_space<vmem>>, %arg3: memref<8x128xf32, #tpu.memory_space<vmem>>, %arg4: memref<1x1x128xf32, #tpu.memory_space<vmem>>) attributes {dimension_semantics = [#tpu.dimension_semantics<parallel>, #tpu.dimension_semantics<arbitrary>], iteration_bounds = array<i64: 2, 1>, scalar_prefetch = 0 : i64, scratch_operands = 0 : i64, tpu.core_type = #tpu.core_type<tc>, window_params = [{transform_indices = @transform_0, window_bounds = array<i64: 8, 128>}, {transform_indices = @transform_1, window_bounds = array<i64: 8, 128>}, {transform_indices = @transform_2, window_bounds = array<i64: 1, 1, 128>}]} {
    %c0_i32 = arith.constant 0 : i32
    %0 = arith.cmpi eq, %arg1, %c0_i32 : i32
    %1 = arith.extui %0 : i1 to i32
    %c0_i32_0 = arith.constant 0 : i32
    %2 = arith.cmpi ne, %1, %c0_i32_0 : i32
    scf.if %2 {
      %cst_10 = arith.constant 0.000000e+00 : f32
      %13 = vector.broadcast %cst_10 : f32 to vector<1x1x128xf32>
      %c0_11 = arith.constant 0 : index
      %c0_12 = arith.constant 0 : index
      %c0_13 = arith.constant 0 : index
      %14 = vector.load %arg4[%c0_11, %c0_12, %c0_13] : memref<1x1x128xf32, #tpu.memory_space<vmem>>, vector<1x1x128xf32>
      tpu.vector_store %arg4[%c0_11, %c0_12, %c0_13], %13 {strides = array<i32>} : memref<1x1x128xf32, #tpu.memory_space<vmem>>, vector<1x1x128xf32>,
    } else {
    }
    %c0 = arith.constant 0 : index
    %c0_1 = arith.constant 0 : index
    %3 = vector.load %arg2[%c0, %c0_1] : memref<8x128xf32, #tpu.memory_space<vmem>>, vector<8x128xf32>
    %c0_2 = arith.constant 0 : index
    %c0_3 = arith.constant 0 : index
    %4 = vector.load %arg3[%c0_2, %c0_3] : memref<8x128xf32, #tpu.memory_space<vmem>>, vector<8x128xf32>
    %5 = arith.subf %3, %4 : vector<8x128xf32>
    %c0_4 = arith.constant 0 : index
    %c0_5 = arith.constant 0 : index
    %c0_6 = arith.constant 0 : index
    %6 = vector.load %arg4[%c0_4, %c0_5, %c0_6] : memref<1x1x128xf32, #tpu.memory_space<vmem>>, vector<1x1x128xf32>
    %7 = arith.mulf %5, %5 : vector<8x128xf32>
    %cst = arith.constant dense<0.000000e+00> : vector<128xf32>
    %8 = vector.multi_reduction <add>, %7, %cst [0] : vector<8x128xf32> to vector<128xf32>
    %9 = vector.shape_cast %8 : vector<128xf32> to vector<1x128xf32>
    %10 = vector.shape_cast %9 : vector<1x128xf32> to vector<1x1x128xf32>
    %11 = arith.addf %6, %10 : vector<1x1x128xf32>
    %c0_7 = arith.constant 0 : index
    %c0_8 = arith.constant 0 : index
    %c0_9 = arith.constant 0 : index
    %12 = vector.load %arg4[%c0_7, %c0_8, %c0_9] : memref<1x1x128xf32, #tpu.memory_space<vmem>>, vector<1x1x128xf32>
    tpu.vector_store %arg4[%c0_7, %c0_8, %c0_9], %11 {strides = array<i32>} : memref<1x1x128xf32, #tpu.memory_space<vmem>>, vector<1x1x128xf32>,
    return
  }
  func.func @transform_0(%arg0: i32, %arg1: i32) -> (i32, i32) {
    %c1_i32 = arith.constant 1 : i32
    %0 = arith.muli %arg0, %c1_i32 : i32
    %1 = arith.addi %0, %arg1 : i32
    %c0_i32 = arith.constant 0 : i32
    %c0_i32_0 = arith.constant 0 : i32
    return %1, %c0_i32 : i32, i32
  }
  func.func @transform_1(%arg0: i32, %arg1: i32) -> (i32, i32) {
    %c1_i32 = arith.constant 1 : i32
    %0 = arith.muli %arg0, %c1_i32 : i32
    %1 = arith.addi %0, %arg1 : i32
    %c0_i32 = arith.constant 0 : i32
    %c0_i32_0 = arith.constant 0 : i32
    return %1, %c0_i32 : i32, i32
  }
  func.func @transform_2(%arg0: i32, %arg1: i32) -> (i32, i32, i32) {
    %c0_i32 = arith.constant 0 : i32
    %c0_i32_0 = arith.constant 0 : i32
    %c0_i32_1 = arith.constant 0 : i32
    return %arg0, %c0_i32, %c0_i32_0 : i32, i32, i32
  }
}

</mosaic_0001>

<bundles_post_ra>
// kernel: loss_pallas.1
= control target key start
LH: loop header
LB: loop body
LE: loop exit
PB: predicated region body
PF: predicated region fallthrough
CT: control target
= control target key end

     0   :  { %s339_s9 = smov 0   ;;  %s341_s10 = smov 0   ;;  %s372_s0 = inlined_call_operand.vmem [shape: f32[16,128], index: 0, kind: input, shape index: {}]   ;;  %s373_s1 = inlined_call_operand.vmem [shape: f32[16,128], index: 1, kind: input, shape index: {}]   ;;  %s374_s2 = inlined_call_operand.vmem [shape: f32[2,1,128], index: 2, kind: output, shape index: {}]  }
   0x1   :  { %s343_s11 = smov 0  }
   0x2 LB: > { %s24_s12 = sadd.s32 1, %s317_s10  ;;  %p269_p0 = scmp.ge.s32.totalorder %s321_s11, 1  ;;  %s321_s11 = sphi %s343_s11, %s12_s11   ;;  %s317_s10 = sphi %s341_s10, %s376_s10   ;;  %s313_s9 = sphi %s339_s9, %s375_s9  }
   0x3   : > { %p26_p1 = scmp.ge.s32.totalorder %s24_s12, 2  ;;  %p140_p2 = scmp.lt.s32.totalorder %s321_s11, 3 }
   0x5   : > { %s378_s12 = smov (%p26_p1, %s24_s12), 0  ;;  %p141_p3 = pnand %p269_p0, %p140_p2 }
   0x6   : > { %p166_p4 = scmp.lt.s32.totalorder (!%p141_p3), %s313_s9, 1 }
   0x7   : > { %144 = sbr.rel (%p141_p3) target bundleno = 36 (0x24), region = 28 }
   0xc   : > { %s380_s9 = smov (!%p166_p4, %s313_s9), 1  ;;  %v323_v0 = vmov 0.0  }
   0xd   : > { %s270_s13 = sshll.u32 %s380_s9, 3  ;;  %s179_s16 = scalar_lea.vmem %s374_s2, %s380_s9 }
   0xe   : > { %s169_s19 = scalar_lea.vmem %s372_s0, %s270_s13  ;;  %s175_s22 = scalar_lea.vmem %s373_s1, %s270_s13  ;;  %184 = vst [vmem:[%s179_s16] sm:$0x1] %v323_v0 }
   0xf   : > { %v185_v1 = vld [vmem:[%s169_s19] sm:$0xff] }
  0x10   : > { %v186_v2 = vld [vmem:[%s175_s22] sm:$0xff] }
  0x11   : > { %v187_v3 = vsub.f32 %v185_v1, %v186_v2 }
  0x13   : > { %v189_v4 = vmul.f32 %v187_v3, %v187_v3 }
  0x15   : > { %v190_v5 = vrot.slane %v189_v4, 4  ;;  %v188_v10 = vld [vmem:[%s179_s16] sm:$0x1] }
  0x17   : > { %v191_v6 = vadd.f32 %v190_v5, %v189_v4 }
  0x19   : > { %v192_v7 = vrot.slane %v191_v6, 2 }
  0x1b   : > { %v193_v8 = vadd.f32 %v192_v7, %v191_v6 }
  0x1d   : > { %v194_v9 = vrot.slane %v193_v8, 1 }
  0x1f   : > { %v195_v11 = vadd.f32 %v194_v9, %v193_v8 }
  0x21   : > { %v196_v12 = vadd.f32 %v195_v11, %v188_v10 }
  0x23   : > { %197 = vst [vmem:[%s179_s16] sm:$0x1] %v196_v12 }
  0x24 PF: > { %s12_s11 = sadd.s32 1, %s321_s11   ;;  %s375_s9 = smov %s317_s10 }
  0x25   : > { %p9_p5 = scmp.ge.s32.totalorder %s12_s11, 4   ;;  %s376_s10 = smov %s378_s12 }
  0x27   :  { %11 = sbr.rel (!%p9_p5) target bundleno = 2 (0x2), region = 65 }

</bundles_post_ra>
